<compile_context>
chip_gen: v6e
topology: v6e:2x2x1
jax: 0.10.0
libtpu: 0.0.40
codegen_flags: <defaults>
</compile_context>

<pallas_src>
import functools
import math

import jax
import jax.numpy as jnp
from jax import lax
from jax.experimental import pallas as pl
from jax.experimental.pallas import tpu as pltpu

_LN_EPS = 1e-5          # torch.nn.LayerNorm default
_NEG_INF = -1e30        # finite "minus infinity" (avoids inf-inf NaNs)


# ----------------------------------------------------------------------------
# Helpers
# ----------------------------------------------------------------------------
def _round_up(x, m):
    return ((x + m - 1) // m) * m


def _pick_tile(dim, target, mult):
    """Largest tile <= target that divides dim and is a multiple of `mult`
    (falls back to the full dim, which always satisfies the TPU block rules)."""
    if dim <= target:
        return dim
    t = (target // mult) * mult
    while t >= mult:
        if dim % t == 0:
            return t
        t -= mult
    return dim


def _layer_norm(t, gamma, beta):
    mu = jnp.mean(t, axis=-1, keepdims=True)
    var = jnp.mean((t - mu) ** 2, axis=-1, keepdims=True)
    return (t - mu) * lax.rsqrt(var + _LN_EPS) * gamma + beta


# ----------------------------------------------------------------------------
# Kernels
# ----------------------------------------------------------------------------
def _qkv_proj_kernel(x_ref, w_ref, b_ref, o_ref):
    """Fused QKV projection: (TQ, D) @ (D, 3D) + b -> bf16 (TQ, 3D)."""
    x = x_ref[0].astype(jnp.bfloat16)
    o_ref[0] = (jnp.dot(x, w_ref[...], preferred_element_type=jnp.float32)
                + b_ref[...]).astype(jnp.bfloat16)


def _attn_kernel(q_ref, k_ref, v_ref, x_ref, wo_ref, aux_ref,
                 y_ref, m_sc, l_sc, acc_sc, *, tq, tk, num_heads):
    """Flash-style causal MHA (all heads batched) + out-proj + residual + LN1."""
    qi = pl.program_id(1)
    ki = pl.program_id(2)

    @pl.when(ki == 0)
    def _():
        m_sc[...] = jnp.full_like(m_sc, _NEG_INF)
        l_sc[...] = jnp.zeros_like(l_sc)
        acc_sc[...] = jnp.zeros_like(acc_sc)

    # Skip kv tiles that are entirely above the causal diagonal.
    @pl.when(ki * tk <= qi * tq + (tq - 1))
    def _():
        q = q_ref[0]                                   # (H, TQ, Hd) bf16 (pre-scaled)
        k = k_ref[0]                                   # (H, TK, Hd) bf16
        v = v_ref[0]                                   # (H, TK, Hd) bf16
        s = jnp.einsum('hqd,hkd->hqk', q, k,
                       preferred_element_type=jnp.float32)        # (H, TQ, TK) f32

        q_pos = qi * tq + lax.broadcasted_iota(jnp.int32, (tq, tk), 0)
        k_pos = ki * tk + lax.broadcasted_iota(jnp.int32, (tq, tk), 1)
        s = jnp.where((k_pos <= q_pos)[None, :, :], s, _NEG_INF)

        m_new = jnp.maximum(m_sc[...], jnp.max(s, axis=-1, keepdims=True))
        alpha = jnp.exp(m_sc[...] - m_new)
        p = jnp.exp(s - m_new)
        l_sc[...] = alpha * l_sc[...] + jnp.sum(p, axis=-1, keepdims=True)
        acc_sc[...] = alpha * acc_sc[...] + jnp.einsum(
            'hqk,hkd->hqd', p.astype(jnp.bfloat16), v,
            preferred_element_type=jnp.float32)
        m_sc[...] = m_new

    @pl.when(ki == pl.num_programs(2) - 1)
    def _():
        attn = acc_sc[...] * pl.reciprocal(l_sc[...], approx=True)   # (H, TQ, Hd) f32
        merged = jnp.concatenate([attn[h] for h in range(num_heads)],
                                 axis=-1)                            # (TQ, D)
        proj = jnp.dot(merged.astype(jnp.bfloat16), wo_ref[...],
                       preferred_element_type=jnp.float32)
        aux = aux_ref[...]                       # rows: [bo, ln1_gamma, ln1_beta]
        t = x_ref[0] + proj + aux[0:1]
        y_ref[0] = _layer_norm(t, aux[1:2], aux[2:3])


def _ffn_kernel(y_ref, w1_ref, b1_ref, w2_ref, aux_ref, z_ref, acc_sc):
    """GELU FFN tiled over F (reduction grid axis) + residual + LN2."""
    fi = pl.program_id(2)

    @pl.when(fi == 0)
    def _():
        acc_sc[...] = jnp.zeros_like(acc_sc)

    y = y_ref[0]                                                   # (TQ, D) f32
    h = jnp.dot(y.astype(jnp.bfloat16), w1_ref[...],
                preferred_element_type=jnp.float32) + b1_ref[...]
    h = 0.5 * h * (1.0 + lax.erf(h * (1.0 / math.sqrt(2.0))))      # exact GELU
    acc_sc[...] += jnp.dot(h.astype(jnp.bfloat16), w2_ref[...],
                           preferred_element_type=jnp.float32)

    @pl.when(fi == pl.num_programs(2) - 1)
    def _():
        aux = aux_ref[...]                       # rows: [b2, ln2_gamma, ln2_beta]
        t = y + acc_sc[...] + aux[0:1]
        z_ref[0] = _layer_norm(t, aux[1:2], aux[2:3])


def _classifier_kernel(x_ref, wc_ref, bc_ref, o_ref):
    o_ref[0] = (jnp.dot(x_ref[0].astype(jnp.bfloat16), wc_ref[...],
                        preferred_element_type=jnp.float32) + bc_ref[...])


# ----------------------------------------------------------------------------
# pallas_call wrappers
# ----------------------------------------------------------------------------
def qkv_projection(x, wqkv, bqkv, tq):
    B, L, D = x.shape
    threeD = wqkv.shape[1]
    return pl.pallas_call(
        _qkv_proj_kernel,
        out_shape=jax.ShapeDtypeStruct((B, L, threeD), jnp.bfloat16),
        grid=(B, L // tq),
        in_specs=[pl.BlockSpec((1, tq, D), lambda b, i: (b, i, 0)),
                  pl.BlockSpec((D, threeD), lambda b, i: (0, 0)),
                  pl.BlockSpec((1, threeD), lambda b, i: (0, 0))],
        out_specs=pl.BlockSpec((1, tq, threeD), lambda b, i: (b, i, 0)),
        compiler_params=pltpu.CompilerParams(
            dimension_semantics=("parallel", "parallel")),
    )(x, wqkv, bqkv)


def attention_block(q, k, v, x, wo, attn_aux, tq, tk):
    B, H, L, Hd = q.shape
    D = H * Hd
    kernel = functools.partial(_attn_kernel, tq=tq, tk=tk, num_heads=H)
    return pl.pallas_call(
        kernel,
        out_shape=jax.ShapeDtypeStruct((B, L, D), jnp.float32),
        grid=(B, L // tq, L // tk),
        in_specs=[
            pl.BlockSpec((1, H, tq, Hd), lambda b, i, j: (b, 0, i, 0)),   # q
            pl.BlockSpec((1, H, tk, Hd), lambda b, i, j: (b, 0, j, 0)),   # k
            pl.BlockSpec((1, H, tk, Hd), lambda b, i, j: (b, 0, j, 0)),   # v
            pl.BlockSpec((1, tq, D), lambda b, i, j: (b, i, 0)),          # residual x
            pl.BlockSpec((D, D), lambda b, i, j: (0, 0)),                 # wo
            pl.BlockSpec((3, D), lambda b, i, j: (0, 0)),                 # bo/gamma/beta
        ],
        out_specs=pl.BlockSpec((1, tq, D), lambda b, i, j: (b, i, 0)),
        scratch_shapes=[pltpu.VMEM((H, tq, 1), jnp.float32),
                        pltpu.VMEM((H, tq, 1), jnp.float32),
                        pltpu.VMEM((H, tq, Hd), jnp.float32)],
        compiler_params=pltpu.CompilerParams(
            dimension_semantics=("parallel", "parallel", "arbitrary")),
    )(q, k, v, x, wo, attn_aux)


def ffn_block(y, w1, b1, w2, ffn_aux, tq, tf):
    B, L, D = y.shape
    F = w1.shape[1]
    return pl.pallas_call(
        _ffn_kernel,
        out_shape=jax.ShapeDtypeStruct((B, L, D), jnp.float32),
        grid=(B, L // tq, F // tf),
        in_specs=[
            pl.BlockSpec((1, tq, D), lambda b, i, f: (b, i, 0)),
            pl.BlockSpec((D, tf), lambda b, i, f: (0, f)),
            pl.BlockSpec((1, tf), lambda b, i, f: (0, f)),
            pl.BlockSpec((tf, D), lambda b, i, f: (f, 0)),
            pl.BlockSpec((3, D), lambda b, i, f: (0, 0)),
        ],
        out_specs=pl.BlockSpec((1, tq, D), lambda b, i, f: (b, i, 0)),
        scratch_shapes=[pltpu.VMEM((tq, D), jnp.float32)],
        compiler_params=pltpu.CompilerParams(
            dimension_semantics=("parallel", "parallel", "arbitrary")),
    )(y, w1, b1, w2, ffn_aux)


def classifier(x, wc, bc, tq, tv):
    B, L, D = x.shape
    V = wc.shape[1]
    return pl.pallas_call(
        _classifier_kernel,
        out_shape=jax.ShapeDtypeStruct((B, L, V), jnp.float32),
        grid=(B, L // tq, V // tv),
        in_specs=[pl.BlockSpec((1, tq, D), lambda b, i, j: (b, i, 0)),
                  pl.BlockSpec((D, tv), lambda b, i, j: (0, j)),
                  pl.BlockSpec((1, tv), lambda b, i, j: (0, j))],
        out_specs=pl.BlockSpec((1, tq, tv), lambda b, i, j: (b, i, j)),
        compiler_params=pltpu.CompilerParams(
            dimension_semantics=("parallel", "parallel", "parallel")),
    )(x, wc, bc)


# ----------------------------------------------------------------------------
# Parameters (deterministic, synthetic)
# ----------------------------------------------------------------------------
def make_positional_encoding(max_len, embed_dim):
    pos = jnp.arange(max_len, dtype=jnp.float32)[:, None]
    freqs = jnp.exp(jnp.arange(0, embed_dim, 2, dtype=jnp.float32)
                    * (-math.log(10000.0) / embed_dim))[None, :]
    args = pos * freqs
    pe = jnp.zeros((max_len, embed_dim), jnp.float32)
    pe = pe.at[:, 0::2].set(jnp.sin(args))
    pe = pe.at[:, 1::2].set(jnp.cos(args))
    return pe


def init_params(key, *, vocab_size, embed_dim, num_heads, feedforward_dim,
                num_layers, max_length, pad_id):
    D, F, H = embed_dim, feedforward_dim, num_heads
    Hd = D // H
    l_pad = _round_up(max_length, 8)

    def nrm(k, shape, scale=0.02):
        return scale * jax.random.normal(k, shape, dtype=jnp.float32)

    keys = jax.random.split(key, num_layers + 2)
    emb = nrm(keys[0], (vocab_size, D))
    emb = emb.at[pad_id].set(0.0)                     # padding_idx row is zeros

    qscale = 1.0 / math.sqrt(Hd)
    layers = []
    for li in range(num_layers):
        ks = jax.random.split(keys[1 + li], 4)
        wqkv = nrm(ks[0], (D, 3 * D))
        wqkv = wqkv.at[:, :D].multiply(qscale)        # fold 1/sqrt(Hd) into W_q
        bqkv = jnp.zeros((1, 3 * D), jnp.float32)
        bqkv = bqkv.at[:, :D].multiply(qscale)
        ln_pack = jnp.stack([jnp.zeros((D,), jnp.float32),   # bias
                             jnp.ones((D,), jnp.float32),    # gamma
                             jnp.zeros((D,), jnp.float32)])  # beta
        layers.append(dict(
            wqkv=wqkv.astype(jnp.bfloat16), bqkv=bqkv,
            wo=nrm(ks[1], (D, D)).astype(jnp.bfloat16),
            attn_aux=ln_pack,
            w1=nrm(ks[2], (D, F)).astype(jnp.bfloat16),
            b1=jnp.zeros((1, F), jnp.float32),
            w2=nrm(ks[3], (F, D)).astype(jnp.bfloat16),
            ffn_aux=ln_pack,
        ))

    wc = nrm(keys[-1], (D, vocab_size)).astype(jnp.bfloat16)
    bc = jnp.zeros((1, vocab_size), jnp.float32)

    config = dict(
        embed_dim=D, num_heads=H, head_dim=Hd, pad_id=pad_id, l_pad=l_pad,
        tq=_pick_tile(l_pad, 128, 8), tk=_pick_tile(l_pad, 128, 8),
        tf=_pick_tile(F, 512, 128), tv=_pick_tile(vocab_size, 2048, 128))
    return dict(embedding=emb, pe=make_positional_encoding(l_pad, D),
                layers=layers, wc=wc, bc=bc, config=config)


# ----------------------------------------------------------------------------
# Forward pass (TransformerForStoryGeneration.forward)
# ----------------------------------------------------------------------------
def transformer_forward(params, indices, lengths):
    cfg = params["config"]
    B = indices.shape[0]
    L, H, D, Hd = cfg["l_pad"], cfg["num_heads"], cfg["embed_dim"], cfg["head_dim"]
    tq, tk, tf, tv = cfg["tq"], cfg["tk"], cfg["tf"], cfg["tv"]

    # Static padded length: pad with pad_id; causal masking keeps the valid prefix exact.
    w = min(indices.shape[1], L)
    idx = jnp.full((B, L), cfg["pad_id"], dtype=jnp.int32)
    idx = idx.at[:, :w].set(indices[:, :w].astype(jnp.int32))

    # Glue: embedding lookup + positional encoding.
    x = params["embedding"][idx] + params["pe"][None, :, :]

    for lp in params["layers"]:
        qkv = qkv_projection(x, lp["wqkv"], lp["bqkv"], tq)          # (B, L, 3D) bf16
        # Glue: head-split once per layer -> (3, B, H, L, Hd); reused by every q-tile.
        qkv = qkv.reshape(B, L, 3, H, Hd).transpose(2, 0, 3, 1, 4)
        q, k, v = qkv[0], qkv[1], qkv[2]
        y = attention_block(q, k, v, x, lp["wo"], lp["attn_aux"], tq, tk)
        x = ffn_block(y, lp["w1"], lp["b1"], lp["w2"], lp["ffn_aux"], tq, tf)

    logits = classifier(x, params["wc"], params["bc"], tq, tv)        # (B, L, V)

    # Match the reference output length (crop only; all kernel shapes stay static).
    l_out = int(jnp.max(lengths))
    return logits[:, :l_out]


# ----------------------------------------------------------------------------
if __name__ == "__main__":
    VOCAB, EMBED, HEADS, FFN, LAYERS, MAX_LEN, PAD_ID = 64, 32, 2, 64, 2, 16, 0
    B = 2

    key = jax.random.PRNGKey(0)
    k_par, k_idx = jax.random.split(key)

    params = init_params(k_par, vocab_size=VOCAB, embed_dim=EMBED, num_heads=HEADS,
                         feedforward_dim=FFN, num_layers=LAYERS,
                         max_length=MAX_LEN, pad_id=PAD_ID)

    indices = jax.random.randint(k_idx, (B, MAX_LEN), 0, VOCAB, dtype=jnp.int32)
    lengths = jnp.array([8, 6], dtype=jnp.int32)

    logits = transformer_forward(params, indices, lengths)
    jax.block_until_ready(logits)

    assert logits.shape == (B, int(lengths.max()), VOCAB), logits.shape
    assert logits.dtype == jnp.float32
    assert bool(jnp.all(jnp.isfinite(logits)))
    # TODO(synk): autoregressive `inference()` sampling loop (Categorical) not ported.
    print("KERNEL_OK")
</pallas_src>

<mosaic_0001>
module attributes {stable_mosaic.version = 11 : i64} {
  func.func @_qkv_proj_kernel(%arg0: i32, %arg1: i32, %arg2: memref<1x16x32xf32, #tpu.memory_space<vmem>>, %arg3: memref<32x96xbf16, #tpu.memory_space<vmem>>, %arg4: memref<1x96xf32, #tpu.memory_space<vmem>>, %arg5: memref<1x16x96xbf16, #tpu.memory_space<vmem>>) attributes {dimension_semantics = [#tpu.dimension_semantics<parallel>, #tpu.dimension_semantics<parallel>], iteration_bounds = array<i64: 2, 1>, scalar_prefetch = 0 : i64, scratch_operands = 0 : i64, tpu.core_type = #tpu.core_type<tc>, window_params = [{transform_indices = @transform_0, window_bounds = array<i64: 1, 16, 32>}, {pipeline_mode = #tpu.pipeline_mode<synchronous>, transform_indices = @transform_1, window_bounds = array<i64: 32, 96>}, {pipeline_mode = #tpu.pipeline_mode<synchronous>, transform_indices = @transform_2, window_bounds = array<i64: 1, 96>}, {transform_indices = @transform_3, window_bounds = array<i64: 1, 16, 96>}]} {
    %c0 = arith.constant 0 : index
    %c0_0 = arith.constant 0 : index
    %c0_1 = arith.constant 0 : index
    %0 = vector.load %arg2[%c0, %c0_0, %c0_1] : memref<1x16x32xf32, #tpu.memory_space<vmem>>, vector<1x16x32xf32>
    %1 = vector.shape_cast %0 : vector<1x16x32xf32> to vector<16x32xf32>
    %2 = arith.truncf %1 : vector<16x32xf32> to vector<16x32xbf16>
    %c0_2 = arith.constant 0 : index
    %c0_3 = arith.constant 0 : index
    %3 = vector.load %arg3[%c0_2, %c0_3] : memref<32x96xbf16, #tpu.memory_space<vmem>>, vector<32x96xbf16>
    %cst = arith.constant dense<0.000000e+00> : vector<16x96xf32>
    %4 = tpu.matmul %2, %3, %cst {dimension_numbers = #tpu.dot_dimension_numbers<[1], [0], [0], [1], [0, 0, 1, 1], [], []>} : vector<16x32xbf16>, vector<32x96xbf16>, vector<16x96xf32> -> vector<16x96xf32>
    %c0_4 = arith.constant 0 : index
    %c0_5 = arith.constant 0 : index
    %5 = vector.load %arg4[%c0_4, %c0_5] : memref<1x96xf32, #tpu.memory_space<vmem>>, vector<1x96xf32>
    %6 = vector.broadcast %5 : vector<1x96xf32> to vector<16x96xf32>
    %7 = arith.addf %4, %6 : vector<16x96xf32>
    %8 = arith.truncf %7 : vector<16x96xf32> to vector<16x96xbf16>
    %c0_6 = arith.constant 0 : index
    %c0_7 = arith.constant 0 : index
    %c0_8 = arith.constant 0 : index
    %9 = vector.load %arg5[%c0_6, %c0_7, %c0_8] : memref<1x16x96xbf16, #tpu.memory_space<vmem>>, vector<1x16x96xbf16>
    %10 = vector.shape_cast %9 : vector<1x16x96xbf16> to vector<16x96xbf16>
    %11 = vector.shape_cast %8 : vector<16x96xbf16> to vector<1x16x96xbf16>
    tpu.vector_store %arg5[%c0_6, %c0_7, %c0_8], %11 {strides = array<i32>} : memref<1x16x96xbf16, #tpu.memory_space<vmem>>, vector<1x16x96xbf16>,
    return
  }
  func.func @transform_0(%arg0: i32, %arg1: i32) -> (i32, i32, i32) {
    %c0_i32 = arith.constant 0 : i32
    %c0_i32_0 = arith.constant 0 : i32
    return %arg0, %arg1, %c0_i32 : i32, i32, i32
  }
  func.func @transform_1(%arg0: i32, %arg1: i32) -> (i32, i32) {
    %c0_i32 = arith.constant 0 : i32
    %c0_i32_0 = arith.constant 0 : i32
    %c0_i32_1 = arith.constant 0 : i32
    return %c0_i32, %c0_i32_0 : i32, i32
  }
  func.func @transform_2(%arg0: i32, %arg1: i32) -> (i32, i32) {
    %c0_i32 = arith.constant 0 : i32
    %c0_i32_0 = arith.constant 0 : i32
    %c0_i32_1 = arith.constant 0 : i32
    return %c0_i32, %c0_i32_0 : i32, i32
  }
  func.func @transform_3(%arg0: i32, %arg1: i32) -> (i32, i32, i32) {
    %c0_i32 = arith.constant 0 : i32
    %c0_i32_0 = arith.constant 0 : i32
    return %arg0, %arg1, %c0_i32 : i32, i32, i32
  }
}

</mosaic_0001>

<bundles_post_ra>
// kernel: tpu_custom_call.1
= control target key start
LH: loop header
LB: loop body
LE: loop exit
PB: predicated region body
PF: predicated region fallthrough
CT: control target
= control target key end

     0   :  { %8 = vsyncpa [#allocation3], 0  ;;  %s897_s0 = inlined_call_operand.hbm [shape: f32[2,16,32], index: 0, kind: input, shape index: {}]   ;;  %s898_s1 = inlined_call_operand.hbm [shape: bf16[32,96], index: 1, kind: input, shape index: {}]   ;;  %s899_s2 = inlined_call_operand.vmem [shape: f32[1,96], index: 2, kind: input, shape index: {}]   ;;  %s900_s3 = inlined_call_operand.hbm [shape: bf16[2,16,96], index: 3, kind: output, shape index: {}]  }
   0x1   :  { %10 = vsyncpa [#allocation3 + $0x1], 0 }
   0x2   :  { %11 = vsyncpa [#allocation6], 0 }
   0x3   :  { %12 = vsyncpa [#allocation4], 0 }
   0x4   :  { %14 = vsyncpa [#allocation4 + $0x1], 0  ;;  %s712_s12 = smov 0   ;;  %s714_s13 = smov 0  }
   0x5   :  { %s716_s14 = smov 0   ;;  %s718_s15 = smov 0  }
   0x6   :  { %s720_s16 = smov 0   ;;  %s722_s17 = smov 0  }
   0x7 LB: > { %s420_s18 = sadd.s32 4294967295, %s679_s17   ;;  %s421_s19 = sadd.s32 4294967294, %s679_s17   ;;  %s679_s17 = sphi %s722_s17, %s20_s17   ;;  %s675_s16 = sphi %s720_s16, %s918_s16   ;;  %s671_s15 = sphi %s718_s15, %s917_s15   ;;  %s667_s14 = sphi %s716_s14, %s916_s14   ;;  %s663_s13 = sphi %s714_s13, %s915_s13   ;;  %s659_s12 = sphi %s712_s12, %s914_s12  }
   0x8   : > { %p54_p0 = scmp.ne.s32.totalorder %s663_s13, %s659_s12  ;;  %p746_p1 = scmp.eq.s32.totalorder %s420_s18, 0 }
   0x9   : > { %p750_p2 = scmp.eq.s32.totalorder %s420_s18, 1  ;;  %p128_p3 = scmp.eq.s32.totalorder %s421_s19, 1 }
   0xa   : > { %p756_p4 = por %p746_p1, %p54_p0  ;;  %p422_p5 = scmp.ge.s32.totalorder %s679_s17, 1 }
   0xb   : > { %p761_p6 = por %p128_p3, %p54_p0  ;;  %p135_p7 = scmp.lt.s32.totalorder %s679_s17, 3 }
   0xc   : > { %s904_s22 = scalar_select %p756_p4, 1, 0 }
   0xd   : > { %s905_s23 = scalar_select %p761_p6, 1, 0 }
   0xe   : > { %p766_p8 = pnand %p422_p5, %p135_p7  ;;  %s681_s25 = smov [#allocation5]  }
   0xf   : > { %s147_s26 = sshll.u32 %s681_s25, 4  ;;  %s32_s28 = sadd.s32 1, %s675_s16  ;;  %s148_s26 = int_to_ptr.vmem [resolvable:$true] %s147_s26 }
  0x10   : > { %p466_p9 = pneg %p766_p8  ;;  %s552_s29 = scalar_lea.vmem %s148_s26, 256 }
  0x11   : > { %p553_p13 = scmp.ne.s32.totalorder %s148_s26, %s552_s29  ;;  %p560_p5 = scmp.lt.s32.totalorder %s148_s26, %s148_s26 }
  0x12   : > { %p775_p11 = pnand %p466_p9, %p746_p1  ;;  %p561_p7 = scmp.lt.s32.totalorder %s552_s29, %s552_s29 }
  0x14   : > { %p543_p12 = pneg %p775_p11  ;;  %p562_p6 = por %p561_p7, %p560_p5 }
  0x16   : > { %p555_p0 = pnand %p553_p13, %p543_p12 }
  0x18   : > { %p556_p3 = pneg %p555_p0 }
  0x1a   : > { %p563_p4 = pnand %p562_p6, %p556_p3 }
  0x1c   : > { %566 = shalt.err (!%p563_p4)
}
  0x1d   : > { %s682_s30 = smov 64   ;;  %s683_s4 = smov 4  }
  0x1e   : > { %469 = dma.hbm_to_vmem [thread:$0]  (!%p775_p11), %s898_s1, 256, %s148_s26, [#allocation6], %s682_s30, %s682_s30, %s683_s4  }
  0x1f   : > { %p34_p6 = scmp.ge.s32.totalorder %s32_s28, 2  ;;  %s41_s7 = sadd.s32 1, %s667_s14 }
  0x20   : > { %p48_p4 = scmp.ne.s32.totalorder %s667_s14, %s663_s13  ;;  %p49_p9 = scmp.eq.s32.totalorder %s679_s17, 0 }
  0x21   : > { %s920_s28 = smov (%p34_p6, %s32_s28), 0  ;;  %p479_p0 = scmp.lt.s32.totalorder %s679_s17, 2 }
  0x22   : > { %p793_p12 = por %p49_p9, %p48_p4  ;;  %p799_p13 = por %p750_p2, %p48_p4 }
  0x23   : > { %s36_s10 = ssub.s32 %s675_s16, %s920_s28  ;;  %s164_s11 = sand.u32 1, %s667_s14  }
  0x24   : > { %p39_p11 = scmp.eq.s32.totalorder %s36_s10, 0  ;;  %s425_s18 = sshll.u32 %s164_s11, 4 }
  0x25   : > { %s443_s25 = sshll.u32 %s675_s16, 8  ;;  %s168_s30 = scalar_lea.vmem [#allocation2], %s425_s18 }
  0x26   : > { %s808_s19 = scalar_select %p39_p11, %s667_s14, %s41_s7  }
  0x27   : > { %s176_s29 = scalar_lea.hbm %s897_s0, %s443_s25  ;;  %s177_s4 = sshll.u32 %s168_s30, 4  ;;  %s178_s4 = int_to_ptr.vmem [resolvable:$true] %s177_s4 }
  0x28   : > { %p816_p2 = pnand %p479_p0, %p793_p12  ;;  %s165_s5 = scalar_lea.sflag [#allocation3], %s164_s11 }
  0x29   : > { %s580_s6 = scalar_lea.vmem %s178_s4, 256  ;;  %s684_s7 = smov [#allocation2]  }
  0x2a   : > { %p569_p3 = pneg %p816_p2  ;;  %p581_p5 = scmp.ne.s32.totalorder %s178_s4, %s580_s6 }
  0x2b   : > { %s585_s10 = sshll.u32 %s684_s7, 4  ;;  %s586_s10 = int_to_ptr.vmem [resolvable:$false] %s585_s10 }
  0x2c   : > { %p583_p7 = pnand %p581_p5, %p569_p3  ;;  %s587_s25 = scalar_lea.vmem %s586_s10, 512 }
  0x2d   : > { %p588_p4 = scmp.lt.s32.totalorder %s178_s4, %s586_s10  ;;  %p589_p9 = scmp.lt.s32.totalorder %s587_s25, %s580_s6 }
  0x2e   : > { %p584_p6 = pneg %p583_p7 }
  0x2f   : > { %p590_p11 = por %p589_p9, %p588_p4 }
  0x31   : > { %p591_p10 = pnand %p590_p11, %p584_p6 }
  0x33   : > { %594 = shalt.err (!%p591_p10)
}
  0x34   : > { %s685_s8 = smov 128   ;;  %s686_s18 = smov 8  }
  0x35   : > { %473 = dma.hbm_to_vmem [thread:$0]  (!%p816_p2), %s176_s29, 256, %s178_s4, %s165_s5, %s685_s8, %s685_s8, %s686_s18  }
  0x36   : > { %189 = sbr.rel (%p766_p8) target bundleno = 286 (0x11e), region = 32  ;;  %s827_s11 = sand.u32 (!%p766_p8), 1, %s663_s13  }
  0x37   : > { %s429_s26 = sshll.u32 (!%p766_p8), %s827_s11, 4  ;;  %s192_s27 = scalar_lea.sflag (!%p766_p8), [#allocation3], %s827_s11 }
  0x38   : > { %s195_s30 = scalar_lea.vmem (!%p766_p8), [#allocation2], %s429_s26  ;;  %p911_p12 = scmp.ne.s32.totalorder (!%p766_p8), %s904_s22, 0 }
  0x3b   : > { %646 = dma.done.wait (%p911_p12), %s192_s27, 256  }
  0x3c   : > { %648 = vsyncadd (%p911_p12), %s192_s27, 4294967040 }
  0x3d   : > { %650 = dma.done.wait (%p746_p1), [#allocation6], 256  }
  0x3e   : > { %652 = vsyncadd (%p746_p1), [#allocation6], 4294967040  ;;  %v687_v0 = vmov 0.0   ;;  %vm688_vm0 = vmmov 0   ;;  %v539_v1 = vld [vmem:[#allocation5 + $0x8] sm:$0xff]   ;;  %v540_v2 = vld [vmem:[#allocation5] sm:$0xff]  }
  0x3f   : > { %450 = vmatprep.subr.bf16.mxu0 %v687_v0  ;;  %454 = vmatprep.mubr.msk.bf16.mxu0 %vm688_vm0, %v687_v0  ;;  %v225_v3 = vld [vmem:[%s195_s30] sm:$0xff]  ;;  %v226_v4 = vld [vmem:[%s195_s30 + $0x8] sm:$0xff]  ;;  %vm251_vm1 = vcmask 261120   ;;  %s431_s20 = sshll.u32 %s827_s11, 3  ;;  %vm304_vm2 = vcmask 781312   ;;  %s446_s21 = sshll.u32 %s671_s15, 7 }
  0x40   : > { %451 = vmatpush3.bf16.msra.mxu0 %v539_v1  ;;  %v227_v5 = vpack.c.bf16 %v226_v4, %v225_v3  ;;  %v432_v6 = vld [vmem:[%s899_s2] ss:$0 sm:$0xff]  ;;  %s221_s29 = scalar_lea.vmem [#allocation7], %s431_s20  ;;  %s847_s7 = scalar_lea.hbm %s900_s3, %s446_s21 }
  0x41   : > { %452 = vmatprep.subr.bf16.mxu0 %v687_v0  ;;  %s323_s4 = sshll.u32 %s221_s29, 4  ;;  %s308_s10 = scalar_lea.sflag [#allocation4], %s827_s11  ;;  %s849_s4 = int_to_ptr.vmem [resolvable:$true] %s323_s4 }
  0x42   : > { %s595_s25 = scalar_lea.vmem %s849_s4, 128  ;;  %s689_s15 = smov [#allocation7]  }
  0x43   : > { %p596_p1 = scmp.ne.s32.totalorder %s849_s4, %s595_s25  ;;  %s599_s8 = sshll.u32 %s689_s15, 4  ;;  %s600_s8 = int_to_ptr.vmem [resolvable:$false] %s599_s8 }
  0x44   : > { %453 = vmatpush3.bf16.msra.mxu0 %v540_v2  ;;  %s601_s18 = scalar_lea.vmem %s600_s8, 256  ;;  %p602_p0 = scmp.lt.s32.totalorder %s849_s4, %s600_s8 }
  0x45   : > { %p597_p8 = pnand %p596_p1, %p799_p13  ;;  %p603_p2 = scmp.lt.s32.totalorder %s601_s18, %s595_s25 }
  0x47   : > { %455 = vmatmul.mubr.msk.bf16.vlgmr.msra.gmra.mxu0 %vm251_vm1, %v227_v5  ;;  %p598_p10 = pneg %p597_p8  ;;  %p604_p3 = por %p603_p2, %p602_p0 }
  0x49   : > { %p605_p5 = pnand %p604_p3, %p598_p10 }
 0x107   : > { %v289_v7 = vpop.f32.mrf.mxu0 }
 0x108   : > { %v290_v8 = vadd.f32 %v432_v6, %v289_v7 }
 0x109   : > { %v456_v9 = vpop.f32.mrf.mxu0 }
 0x10a   : > { %v444_v10 = vpack.c.bf16 %v290_v8, %v290_v8 }
 0x10b   : > { %v292_v11 = vpop.f32.mrf.mxu0 }
 0x10c   : > { %305 = vst.msk [vmem:[%s221_s29] sm:$0xf] %vm304_vm2, %v444_v10  ;;  %v293_v12 = vadd.f32 %v432_v6, %v292_v11 }
 0x10d   : > { %v457_v13 = vpop.f32.mrf.mxu0 }
 0x10e   : > { %v445_v14 = vpack.c.bf16 %v293_v12, %v293_v12 }
 0x110   : > { %306 = vst.msk [vmem:[%s221_s29 + $0x4] sm:$0xf] %vm304_vm2, %v445_v14 }
 0x111   : > { %608 = shalt.err (!%p605_p5)
}
 0x112   : > { %s609_s26 = scalar_lea.hbm %s847_s7, 128  ;;  %s613_s22 = scalar_lea.hbm %s900_s3, 256 }
 0x113   : > { %p610_p7 = scmp.ne.s32.totalorder %s847_s7, %s609_s26  ;;  %p614_p9 = scmp.lt.s32.totalorder %s847_s7, %s900_s3 }
 0x114   : > { %p615_p11 = scmp.lt.s32.totalorder %s613_s22, %s609_s26 }
 0x115   : > { %p611_p6 = pnand %p610_p7, %p799_p13 }
 0x116   : > { %p616_p12 = por %p615_p11, %p614_p9 }
 0x117   : > { %p612_p4 = pneg %p611_p6 }
 0x119   : > { %p617_p1 = pnand %p616_p12, %p612_p4 }
 0x11b   : > { %620 = shalt.err (!%p617_p1)
}
 0x11c   : > { %s690_s29 = smov 64   ;;  %s691_s21 = smov 4  }
 0x11d   : > { %464 = dma.vmem_to_hbm [thread:$0]  (%p799_p13), %s849_s4, 128, %s847_s7, %s308_s10, %s690_s29, %s690_s29, %s691_s21  }
 0x11e PF: > { %s338_s5 = sand.u32 1, %s659_s12   ;;  %p912_p8 = scmp.ne.s32.totalorder %s905_s23, 0 }
 0x11f   : > { %p913_p10 = scmp.ge.s32.totalorder %s679_s17, 2  ;;  %s339_s6 = scalar_lea.sflag [#allocation4], %s338_s5 }
 0x121   : > { %p475_p0 = pnand %p913_p10, %p912_p8 }
 0x123   : > { %p476_p2 = pneg %p475_p0 }
 0x125   : > { %654 = dma.done.wait (%p476_p2), %s339_s6, 128  }
 0x126   : > { %656 = vsyncadd (%p476_p2), %s339_s6, 4294967168  ;;  %s20_s17 = sadd.s32 1, %s679_s17   ;;  %s914_s12 = smov %s663_s13 }
 0x127   : > { %p17_p3 = scmp.ge.s32.totalorder %s20_s17, 4   ;;  %s915_s13 = smov %s667_s14 }
 0x128   : > { %s916_s14 = smov %s808_s19  ;;  %s917_s15 = smov %s675_s16 }
 0x129   : > { %s918_s16 = smov %s920_s28  ;;  %19 = sbr.rel (!%p17_p3) target bundleno = 7 (0x7), region = 81 }
 0x12e   :  { %344 = vsyncpa [#allocation3], 1 }
 0x12f   :  { %346 = vsyncpa [#allocation3 + $0x1], 1 }
 0x130   :  { %347 = vsyncpa [#allocation6], 1 }
 0x131   :  { %348 = vsyncpa [#allocation4], 1 }
 0x132   :  { %350 = vsyncpa [#allocation4 + $0x1], 1 }

</bundles_post_ra>
